<compile_context>
chip_gen: v7x
topology: tpu7x:2x2x1
jax: 0.10.0
libtpu: 0.0.40
codegen_flags: <defaults>
</compile_context>

<pallas_src>
import jax
import jax.numpy as jnp
from jax.experimental import pallas as pl
from jax.experimental.pallas import tpu as pltpu


def _round_up(x: int, m: int) -> int:
    return (x + m - 1) // m * m


def _cdiv(a: int, b: int) -> int:
    return (a + b - 1) // b


def _vmem_capacity_bytes() -> int:
    """Generation-aware VMEM capacity (64 MiB on v7x, 128 MiB on v5e/v6e)."""
    try:
        return int(pltpu.get_tpu_info().vmem_capacity_bytes)
    except Exception:
        return 64 << 20  # conservative fallback (v7x per-core)


# ----------------------------------------------------------------------------
# Path 1: batched manual DMA gather (table stays in HBM).
# ----------------------------------------------------------------------------
def _dma_gather_kernel(idx_ref, table_ref, out_ref, scratch, sem):
    # idx_ref:   SMEM (padded_b,) int32   (scalar prefetch)
    # table_ref: HBM  (N, D)              (memory_space=pl.ANY, DMA'd manually)
    # out_ref:   VMEM (K*C, D)            output tile for this grid step
    # scratch:   VMEM (2, C, D)           double-buffered row chunks
    # sem:       DMA semaphores (2,)      one per scratch slot
    tbo, _ = out_ref.shape
    _, c, _ = scratch.shape
    k = tbo // c
    base = pl.program_id(0) * tbo  # first batch row handled by this grid step

    def issue_chunk(chunk, slot):
        def body(r, carry):
            row = idx_ref[base + chunk * c + r]
            pltpu.make_async_copy(
                table_ref.at[row], scratch.at[slot, r], sem.at[slot]
            ).start()
            return carry
        jax.lax.fori_loop(0, c, body, 0)

    def wait_chunk(slot):
        def body(r, carry):
            # Same-sized descriptor as the issued per-row copies.
            pltpu.make_async_copy(
                table_ref.at[0], scratch.at[slot, r], sem.at[slot]
            ).wait()
            return carry
        jax.lax.fori_loop(0, c, body, 0)

    # Prime chunk 0, then overlap: prefetch chunk c+1 while draining chunk c.
    issue_chunk(0, 0)
    for chunk in range(k):  # k is small and static
        slot = chunk & 1
        if chunk + 1 < k:
            issue_chunk(chunk + 1, 1 - slot)
        wait_chunk(slot)
        out_ref[chunk * c:(chunk + 1) * c, :] = scratch[slot]


def _autodecoder_dma_gather(vectors: jax.Array, idx: jax.Array) -> jax.Array:
    n, d = vectors.shape
    (batch,) = idx.shape
    itemsize = jnp.dtype(vectors.dtype).itemsize
    pack = max(8, 32 // itemsize)  # sublane packing (8 f32, 16 bf16, 32 int8)

    # Rows per DMA chunk: aim for ~512 KiB chunk buffers, <= 256 rows.
    rows_for_bytes = max(pack, (512 * 1024) // max(1, d * itemsize))
    c = min(256, rows_for_bytes, _round_up(batch, pack))
    c = max(pack, (c // pack) * pack)
    k = min(4, _cdiv(batch, c))          # chunks pipelined inside one grid step
    tbo = c * k                          # rows per grid step (output tile)
    padded_b = _round_up(batch, tbo)
    grid = padded_b // tbo

    idx_pad = jnp.pad(idx, (0, padded_b - batch))   # pad rows gather row 0

    cap = _vmem_capacity_bytes()
    needed = 2 * tbo * d * itemsize + 2 * c * d * itemsize + (1 << 20)
    vmem_limit = int(min(max(needed + (8 << 20), 32 << 20), cap * 7 // 8))

    # TODO(synk): if d is far from a multiple of 128, output stores are masked;
    # padding D here would require rewriting the whole HBM table per call.
    out = pl.pallas_call(
        _dma_gather_kernel,
        out_shape=jax.ShapeDtypeStruct((padded_b, d), vectors.dtype),
        grid_spec=pltpu.PrefetchScalarGridSpec(
            num_scalar_prefetch=1,                       # idx -> SMEM
            grid=(grid,),
            in_specs=[pl.BlockSpec(memory_space=pl.ANY)],  # table stays in HBM
            out_specs=pl.BlockSpec((tbo, d), lambda i, idx_ref: (i, 0)),
            scratch_shapes=[
                pltpu.VMEM((2, c, d), vectors.dtype),
                pltpu.SemaphoreType.DMA((2,)),
            ],
        ),
        compiler_params=pltpu.CompilerParams(
            dimension_semantics=("parallel",),           # no cross-step state
            vmem_limit_bytes=vmem_limit,
        ),
    )(idx_pad, vectors)
    return out[:batch]


# ----------------------------------------------------------------------------
# Path 2: VMEM-resident table, one-hot matmul gather (small bf16/f16 tables).
# ----------------------------------------------------------------------------
def _gather_onehot_kernel(idx_ref, table_ref, out_ref):
    # idx_ref:   (TB, 1)        int32 indices for this batch tile
    # table_ref: (N_pad, D_pad) full latent table (resident across grid steps)
    # out_ref:   (TB, D_pad)    gathered rows
    n_pad = table_ref.shape[0]
    idx = idx_ref[...]                                              # (TB, 1)
    col = jax.lax.broadcasted_iota(jnp.int32, (1, n_pad), 1)        # (1, N_pad)
    one_hot = (col == idx).astype(table_ref.dtype)                  # (TB, N_pad)
    # f32 tables (forced path only): HIGHEST keeps the one-hot selection exact.
    prec = jax.lax.Precision.HIGHEST if table_ref.dtype == jnp.float32 else None
    out_ref[...] = jnp.dot(
        one_hot, table_ref[...],
        preferred_element_type=jnp.float32, precision=prec,
    ).astype(out_ref.dtype)


_ONEHOT_MAX_ROWS = 1024   # MXU/bandwidth crossover cap (conservative across gens)


def _onehot_vmem_needed(n_pad: int, d_pad: int, tb: int, itemsize: int) -> int:
    table_bytes = n_pad * d_pad * itemsize      # x2: default double buffering
    idx_tile = tb * 128 * 4                     # (TB,1) int32 padded to a lane
    out_tile = tb * d_pad * itemsize
    interm = tb * n_pad * (4 + itemsize)        # compare mask + one-hot operand
    acc = tb * d_pad * 4                        # f32 matmul result
    return 2 * table_bytes + 2 * idx_tile + 2 * out_tile + interm + acc


def _onehot_tile(batch: int, itemsize: int) -> int:
    pack = max(8, 32 // itemsize)
    return max(pack, min(256, _round_up(batch, pack)))


def _onehot_path_ok(vectors: jax.Array, batch: int) -> bool:
    dt = jnp.dtype(vectors.dtype)
    if not (jnp.issubdtype(dt, jnp.floating) and dt.itemsize == 2):
        return False                      # f32 etc. -> exact, cheaper DMA gather
    n, d = vectors.shape
    n_pad = _round_up(max(n, 128), 128)
    if n_pad > _ONEHOT_MAX_ROWS:
        return False                      # one-hot matmul would be MXU-bound
    d_pad = _round_up(max(d, 128), 128)
    tb = _onehot_tile(batch, dt.itemsize)
    needed = _onehot_vmem_needed(n_pad, d_pad, tb, dt.itemsize)
    return needed <= (_vmem_capacity_bytes() * 3) // 4   # 48 MiB v7x, 96 MiB v5e/v6e


def _autodecoder_onehot(vectors: jax.Array, idx: jax.Array) -> jax.Array:
    n, d = vectors.shape
    (batch,) = idx.shape
    itemsize = jnp.dtype(vectors.dtype).itemsize
    n_pad = _round_up(max(n, 128), 128)
    d_pad = _round_up(max(d, 128), 128)   # lane-dense output stores
    tb = _onehot_tile(batch, itemsize)
    padded_b = _round_up(batch, tb)

    # Table pad only happens on this path, where the table is <= ~1k rows,
    # so the per-call pad traffic is negligible.
    table = vectors
    if (n_pad, d_pad) != (n, d):
        table = jnp.pad(vectors, ((0, n_pad - n), (0, d_pad - d)))
    idx2d = jnp.pad(idx, (0, padded_b - batch)).reshape(padded_b, 1)

    cap = _vmem_capacity_bytes()
    needed = _onehot_vmem_needed(n_pad, d_pad, tb, itemsize)
    vmem_limit = int(min(max(needed + (8 << 20), 32 << 20), cap * 7 // 8))

    out = pl.pallas_call(
        _gather_onehot_kernel,
        out_shape=jax.ShapeDtypeStruct((padded_b, d_pad), vectors.dtype),
        grid=(padded_b // tb,),
        in_specs=[
            pl.BlockSpec((tb, 1), lambda i: (i, 0)),        # per-tile indices
            pl.BlockSpec((n_pad, d_pad), lambda i: (0, 0)), # resident table
        ],
        out_specs=pl.BlockSpec((tb, d_pad), lambda i: (i, 0)),
        compiler_params=pltpu.CompilerParams(
            dimension_semantics=("parallel",),              # shard batch on v7x
            vmem_limit_bytes=vmem_limit,
        ),
    )(idx2d, table)
    return out[:batch, :d]


# ----------------------------------------------------------------------------
# Public forward
# ----------------------------------------------------------------------------
def autodecoder_forward(vectors: jax.Array, idx: jax.Array,
                        *, method: str = "auto") -> jax.Array:
    """Pallas equivalent of `Autodecoder.forward`: vectors[idx, :].

    vectors: [num_data_pts, latent_dim] float array (the nn.Parameter)
    idx:     [B] integer indices
    method:  "auto" | "dma" | "onehot"
    returns: [B, latent_dim], same dtype as `vectors`
    """
    n, _ = vectors.shape
    (batch,) = idx.shape
    idx = idx.astype(jnp.int32) % n   # PyTorch-style negative wraparound

    if method == "auto":
        method = "onehot" if _onehot_path_ok(vectors, batch) else "dma"
    if method == "onehot":
        return _autodecoder_onehot(vectors, idx)
    return _autodecoder_dma_gather(vectors, idx)


if __name__ == "__main__":
    key = jax.random.PRNGKey(0)
    k_vec, k_idx, k_vec2, k_idx2 = jax.random.split(key, 4)

    # Matches Autodecoder.__init__: vectors = randn(num_data_pts, latent_dim) * sigma
    num_data_pts, latent_dim, sigma = 64, 128, 0.1
    vectors = jax.random.normal(k_vec, (num_data_pts, latent_dim), jnp.float32) * sigma
    batch = 10  # not a multiple of 8 -> exercises batch padding/slicing
    idx = jax.random.randint(k_idx, (batch,), 0, num_data_pts, dtype=jnp.int32)

    # --- Test 1: f32 table -> auto-dispatches to the exact DMA-gather path ---
    out = jax.block_until_ready(autodecoder_forward(vectors, idx))
    ref = vectors[idx, :]
    assert out.shape == (batch, latent_dim) and out.dtype == vectors.dtype
    assert jnp.array_equal(out, ref), "DMA gather mismatch vs reference"

    # --- Test 2: bf16 table -> auto-dispatches to the VMEM-resident one-hot path ---
    vectors_bf16 = vectors.astype(jnp.bfloat16)
    out2 = jax.block_until_ready(autodecoder_forward(vectors_bf16, idx))
    ref2 = vectors_bf16[idx, :]
    assert out2.shape == ref2.shape and out2.dtype == jnp.bfloat16
    assert jnp.array_equal(out2, ref2), "one-hot gather mismatch vs reference"

    # --- Test 3: larger f32 case exercising multi-chunk DMA pipelining + padding ---
    n3, d3, b3 = 512, 128, 300
    vec3 = jax.random.normal(k_vec2, (n3, d3), jnp.float32)
    idx3 = jax.random.randint(k_idx2, (b3,), 0, n3, dtype=jnp.int32)
    out3 = jax.block_until_ready(autodecoder_forward(vec3, idx3, method="dma"))
    assert jnp.array_equal(out3, vec3[idx3, :]), "multi-chunk DMA gather mismatch"

    print("KERNEL_OK")
</pallas_src>

<mosaic_0001>
module attributes {stable_mosaic.version = 11 : i64} {
  func.func @_dma_gather_kernel(%arg0: i32, %arg1: memref<16xi32, #tpu.memory_space<smem>>, %arg2: memref<64x128xf32, #tpu.memory_space<any>>, %arg3: memref<16x128xf32, #tpu.memory_space<vmem>>, %arg4: memref<2x16x128xf32, #tpu.memory_space<vmem>>, %arg5: memref<2x!tpu.dma_semaphore, #tpu.memory_space<semaphore_mem>>) attributes {dimension_semantics = [#tpu.dimension_semantics<parallel>], iteration_bounds = array<i64: 1>, scalar_prefetch = 1 : i64, scratch_operands = 2 : i64, tpu.core_type = #tpu.core_type<tc>, window_params = [{}, {transform_indices = @transform_1, window_bounds = array<i64: 16, 128>}]} {
    %c16_i32 = arith.constant 16 : i32
    %0 = arith.muli %arg0, %c16_i32 : i32
    %c0_i32 = arith.constant 0 : i32
    %c16_i32_0 = arith.constant 16 : i32
    %1 = arith.addi %c0_i32, %c16_i32_0 : i32
    %c1_i32 = arith.constant 1 : i32
    scf.for %arg6 = %c0_i32 to %1 step %c1_i32  : i32 {
      %c0_i32_10 = arith.constant 0 : i32
      %6 = arith.addi %0, %c0_i32_10 : i32
      %7 = arith.addi %6, %arg6 : i32
      %8 = arith.index_cast %7 : i32 to index
      %9 = memref.load %arg1[%8] : memref<16xi32, #tpu.memory_space<smem>>
      %c0_i32_11 = arith.constant 0 : i32
      %c0_i32_12 = arith.constant 0 : i32
      %c0_i32_13 = arith.constant 0 : i32
      %10 = tpu.memref_slice %arg2[%9, %c0_i32_13] : memref<64x128xf32, #tpu.memory_space<any>> -> memref<1x128xf32, #tpu.memory_space<any>>
      %11 = tpu.memref_squeeze %10 : memref<1x128xf32, #tpu.memory_space<any>> -> memref<128xf32, #tpu.memory_space<any>>
      %c0_i32_14 = arith.constant 0 : i32
      %12 = tpu.memref_slice %arg4[%c0_i32_11, %arg6, %c0_i32_14] : memref<2x16x128xf32, #tpu.memory_space<vmem>> -> memref<1x1x128xf32, #tpu.memory_space<vmem>>
      %13 = tpu.memref_squeeze %12 : memref<1x1x128xf32, #tpu.memory_space<vmem>> -> memref<128xf32, #tpu.memory_space<vmem>>
      %14 = tpu.memref_slice %arg5[%c0_i32_12] : memref<2x!tpu.dma_semaphore, #tpu.memory_space<semaphore_mem>> -> memref<1x!tpu.dma_semaphore, #tpu.memory_space<semaphore_mem>>
      %15 = tpu.memref_squeeze %14 : memref<1x!tpu.dma_semaphore, #tpu.memory_space<semaphore_mem>> -> memref<!tpu.dma_semaphore, #tpu.memory_space<semaphore_mem>>
      tpu.enqueue_dma source(%11 : memref<128xf32, #tpu.memory_space<any>>) target(%13 : memref<128xf32, #tpu.memory_space<vmem>>) target_semaphore(%15 : memref<!tpu.dma_semaphore, #tpu.memory_space<semaphore_mem>>)
    }
    %c16_i32_1 = arith.constant 16 : i32
    %c0_i32_2 = arith.constant 0 : i32
    %c16_i32_3 = arith.constant 16 : i32
    %2 = arith.addi %c0_i32_2, %c16_i32_3 : i32
    %c1_i32_4 = arith.constant 1 : i32
    scf.for %arg6 = %c0_i32_2 to %2 step %c1_i32_4  : i32 {
      %c0_i32_10 = arith.constant 0 : i32
      %c0_i32_11 = arith.constant 0 : i32
      %c0_i32_12 = arith.constant 0 : i32
      %c0_i32_13 = arith.constant 0 : i32
      %6 = tpu.memref_slice %arg2[%c0_i32_10, %c0_i32_13] : memref<64x128xf32, #tpu.memory_space<any>> -> memref<1x128xf32, #tpu.memory_space<any>>
      %7 = tpu.memref_squeeze %6 : memref<1x128xf32, #tpu.memory_space<any>> -> memref<128xf32, #tpu.memory_space<any>>
      %c0_i32_14 = arith.constant 0 : i32
      %8 = tpu.memref_slice %arg4[%c0_i32_11, %arg6, %c0_i32_14] : memref<2x16x128xf32, #tpu.memory_space<vmem>> -> memref<1x1x128xf32, #tpu.memory_space<vmem>>
      %9 = tpu.memref_squeeze %8 : memref<1x1x128xf32, #tpu.memory_space<vmem>> -> memref<128xf32, #tpu.memory_space<vmem>>
      %10 = tpu.memref_slice %arg5[%c0_i32_12] : memref<2x!tpu.dma_semaphore, #tpu.memory_space<semaphore_mem>> -> memref<1x!tpu.dma_semaphore, #tpu.memory_space<semaphore_mem>>
      %11 = tpu.memref_squeeze %10 : memref<1x!tpu.dma_semaphore, #tpu.memory_space<semaphore_mem>> -> memref<!tpu.dma_semaphore, #tpu.memory_space<semaphore_mem>>
      tpu.wait_dma2 semaphore(%11 : memref<!tpu.dma_semaphore, #tpu.memory_space<semaphore_mem>>) src(%7 : memref<128xf32, #tpu.memory_space<any>>) dst(%9 : memref<128xf32, #tpu.memory_space<vmem>>)
    }
    %c16_i32_5 = arith.constant 16 : i32
    %c0 = arith.constant 0 : index
    %c0_6 = arith.constant 0 : index
    %c0_7 = arith.constant 0 : index
    %3 = vector.load %arg4[%c0, %c0_6, %c0_7] : memref<2x16x128xf32, #tpu.memory_space<vmem>>, vector<1x16x128xf32>
    %4 = vector.shape_cast %3 : vector<1x16x128xf32> to vector<16x128xf32>
    %c0_8 = arith.constant 0 : index
    %c0_9 = arith.constant 0 : index
    %5 = vector.load %arg3[%c0_8, %c0_9] : memref<16x128xf32, #tpu.memory_space<vmem>>, vector<16x128xf32>
    tpu.vector_store %arg3[%c0_8, %c0_9], %4 {strides = array<i32>} : memref<16x128xf32, #tpu.memory_space<vmem>>, vector<16x128xf32>,
    return
  }
  func.func @transform_1(%arg0: i32, %arg1: memref<16xi32, #tpu.memory_space<smem>>) -> (i32, i32) {
    %c0_i32 = arith.constant 0 : i32
    %c0_i32_0 = arith.constant 0 : i32
    return %arg0, %c0_i32 : i32, i32
  }
}

</mosaic_0001>

<bundles_post_ra>
// kernel: tpu_custom_call.1
= control target key start
LH: loop header
LB: loop body
LE: loop exit
PB: predicated region body
PF: predicated region fallthrough
CT: control target
= control target key end

     0   :  { %s253_s0 = inlined_call_operand.hbm [shape: s32[16], index: 0, kind: input, shape index: {}]   ;;  %s254_s1 = inlined_call_operand.hbm [shape: f32[64,128], index: 1, kind: input, shape index: {}]   ;;  %s255_s2 = inlined_call_operand.hbm [shape: f32[16,128], index: 2, kind: output, shape index: {}]  }
   0x1   :  { %s112_s11 = scalar_lea.hbm %s253_s0, 16 }
   0x2   :  { %p113_p0 = scmp.ne.s32.totalorder %s253_s0, %s112_s11  ;;  %p116_p1 = scmp.lt.u32.totalorder %s112_s11, %s253_s0 }
   0x4   :  { %p118_p2 = pnand %p116_p1, %p113_p0 }
   0x6   :  { %121 = shalt.err (!%p118_p2)  }
   0x7   :  { %s190_s16 = smov [#allocation5]  }
   0x8   :  { %8 = dma.hbm_to_smem %s253_s0, 16, %s190_s16, [#allocation4] }
   0x9   :  { %176 = dma.done.wait [#allocation4], 16 }
   0xa   :  { %177 = vsyncadd [#allocation4], 4294967280 }
   0xb   :  { %10 = sfence }
   0xc   :  { %11 = vsyncpa [#allocation7], 0  ;;  %s222_s19 = smov 0  }
   0xd LB: > { %s20_s20 = sld [smem:[#allocation5 + %s184_s19]]  ;;  %s23_s21 = scalar_lea.vmem [#allocation2], %s184_s19  ;;  %s184_s19 = sphi %s222_s19, %s18_s19  }
   0xe   : > { %s31_s22 = sshll.u32 %s23_s21, 4  ;;  %s124_s29 = scalar_lea.hbm %s254_s1, 1024  ;;  %s32_s22 = int_to_ptr.vmem [resolvable:$true] %s31_s22 }
  0x13   : > { %s89_s23 = sshll.u32 %s20_s20, 4 }
  0x14   : > { %s22_s25 = scalar_lea.hbm %s254_s1, %s89_s23 }
  0x15   : > { %s122_s26 = scalar_lea.hbm %s22_s25, 16  ;;  %p125_p4 = scmp.lt.u32.totalorder %s22_s25, %s254_s1 }
  0x16   : > { %p123_p3 = scmp.ne.s32.totalorder %s22_s25, %s122_s26  ;;  %p126_p5 = scmp.lt.u32.totalorder %s124_s29, %s122_s26 }
  0x17   : > { %p128_p7 = scmp.lt.u32.totalorder %s122_s26, %s22_s25 }
  0x18   : > { %p127_p6 = por %p126_p5, %p125_p4 }
  0x1a   : > { %p129_p8 = por %p128_p7, %p127_p6 }
  0x1c   : > { %p130_p9 = pnand %p129_p8, %p123_p3 }
  0x1e   : > { %133 = shalt.err (!%p130_p9)  }
  0x1f   : > { %s134_s4 = scalar_lea.vmem %s32_s22, 16  ;;  %s191_s5 = smov [#allocation2]  }
  0x20   : > { %p135_p10 = scmp.ne.s32.totalorder %s32_s22, %s134_s4  ;;  %s136_s6 = sshll.u32 %s191_s5, 4  ;;  %s137_s6 = int_to_ptr.vmem [resolvable:$false] %s136_s6 }
  0x21   : > { %s138_s7 = scalar_lea.vmem %s137_s6, 512  ;;  %p139_p11 = scmp.lt.s32.totalorder %s32_s22, %s137_s6 }
  0x22   : > { %p140_p12 = scmp.lt.s32.totalorder %s138_s7, %s134_s4 }
  0x24   : > { %p141_p13 = por %p140_p12, %p139_p11 }
  0x26   : > { %p142_p0 = pnand %p141_p13, %p135_p10 }
  0x28   : > { %145 = shalt.err (!%p142_p0)  }
  0x29   : > { %34 = dma.hbm_to_vmem [thread:$0]  %s22_s25, 16, %s32_s22, [#allocation3] }
  0x2a   : > { %s18_s19 = sadd.s32 1, %s184_s19  }
  0x2b   : > { %p15_p1 = scmp.ge.s32.totalorder %s18_s19, 16  }
  0x2c   :  { %s186_s8 = smov (%p15_p1), 0  }
  0x2d   :  { %17 = sbr.rel (!%p15_p1) target bundleno = 13 (0xd), region = 41 }
  0x34 LB: > { %178 = dma.done.wait [#allocation3], 16  ;;  %s188_s8 = sphi %s186_s8, %s40_s8  }
  0x35   : > { %179 = vsyncadd [#allocation3], 4294967280  ;;  %s40_s8 = sadd.s32 1, %s188_s8  }
  0x36   : > { %p37_p2 = scmp.ge.s32.totalorder %s40_s8, 16  }
  0x37   :  { %v43_v0 = vld [vmem:[#allocation2] sm:$0xff] (%p37_p2)  ;;  %v44_v1 = vld [vmem:[#allocation2 + $0x8] sm:$0xff] (%p37_p2)  ;;  %s192_s9 = smov (%p37_p2), [#allocation6]  }
  0x38   :  { %39 = sbr.rel (!%p37_p2) target bundleno = 52 (0x34), region = 52  ;;  %45 = vst [vmem:[#allocation6] sm:$0xff] (%p37_p2), %v43_v0  ;;  %46 = vst [vmem:[#allocation6 + $0x8] sm:$0xff] (%p37_p2), %v44_v1  ;;  %s52_s10 = sshll.u32 (%p37_p2), %s192_s9, 4  ;;  %s53_s10 = int_to_ptr.vmem [resolvable:$true] %s52_s10 }
  0x39   :  { %s146_s11 = scalar_lea.vmem (%p37_p2), %s53_s10, 256  ;;  %p151_p4 = scmp.lt.s32.totalorder (%p37_p2), %s53_s10, %s53_s10 }
  0x3a   :  { %p147_p3 = scmp.ne.s32.totalorder (%p37_p2), %s53_s10, %s146_s11  ;;  %p152_p5 = scmp.lt.s32.totalorder (%p37_p2), %s146_s11, %s146_s11 }
  0x3c   :  { %p153_p6 = por (%p37_p2), %p152_p5, %p151_p4 }
  0x3e   :  { %p154_p7 = pnand (%p37_p2), %p153_p6, %p147_p3 }
  0x40   :  { %157 = shalt.err (!%p154_p7)
}
  0x41   :  { %s158_s13 = scalar_lea.hbm %s255_s2, 256 }
  0x42   :  { %p159_p8 = scmp.ne.s32.totalorder %s255_s2, %s158_s13  ;;  %p162_p9 = scmp.lt.u32.totalorder %s158_s13, %s255_s2 }
  0x44   :  { %p164_p10 = pnand %p162_p9, %p159_p8 }
  0x46   :  { %167 = shalt.err (!%p164_p10)
}
  0x47   :  { %s193_s18 = smov 128   ;;  %s194_s19 = smov 8  }
  0x48   :  { %58 = dma.vmem_to_hbm [thread:$0]  %s53_s10, 256, %s255_s2, [#allocation7], %s193_s18, %s193_s18, %s194_s19  }
  0x49   :  { %180 = dma.done.wait [#allocation7], 256  }
  0x4a   :  { %181 = vsyncadd [#allocation7], 4294967040 }
  0x4b   :  { %62 = vsyncpa [#allocation7], 1 }
  0x4c   :  { %63 = vsyncmov [#allocation3] }
  0x4f   :  { %s64_s22 = vpop.sfrf %63 }
  0x50   :  { %p90_p11 = scmp.ne.s32.totalorder %s64_s22, 0 }
  0x52   :  { %68 = shalt.err (%p90_p11)  }
  0x53   :  { %70 = vsyncmov [#allocation3 + $0x1] }
  0x56   :  { %s71_s23 = vpop.sfrf %70 }
  0x57   :  { %p91_p12 = scmp.ne.s32.totalorder %s71_s23, 0 }
  0x59   :  { %75 = shalt.err (%p91_p12)  }

</bundles_post_ra>
